<compile_context>
chip_gen: v5e
topology: v5e:2x2
jax: 0.10.0
libtpu: 0.0.40
codegen_flags: <defaults>
</compile_context>

<pallas_src>
import functools

import jax
import jax.numpy as jnp
import numpy as np
from jax.experimental import pallas as pl
from jax.experimental.pallas import tpu as pltpu

_LANE = 128
_SUBLANE = 8
_NEG_BIG = -1e30          # pre-softmax logit for padded lanes -> exp() == 0 exactly
_MAX_BATCH_TILE = 512     # ~1 MiB bf16 input tile @ Din=1024; safe for 64 MiB v7x VMEM


def _round_up(x, m):
    return ((x + m - 1) // m) * m


def _log_softmax_f32(z):
    m = jnp.max(z, axis=-1, keepdims=True)
    e = jnp.exp(z - m)
    return z - m - jnp.log(jnp.sum(e, axis=-1, keepdims=True))


# ----------------------------------------------------------------------------
# Fused kernel: ReLU trunk -> value head (Identity) -> policy head (Identity)
# -> log_softmax epilogues.  Layer loops unroll at trace time.
# ----------------------------------------------------------------------------
def _make_fused_kernel(n_trunk, n_v, n_pi):
    n_layers = n_trunk + n_v + n_pi

    def kernel(x_ref, *refs):
        wb = refs[:2 * n_layers]
        log_pi_ref = refs[2 * n_layers]
        log_v_ref = refs[2 * n_layers + 1]

        def linear(h, li, relu):
            w = wb[2 * li][...]                       # bf16 (Din_p, Dout_p)
            b = wb[2 * li + 1][...]                   # f32  (1,    Dout_p)
            y = jnp.dot(h.astype(jnp.bfloat16), w,
                        preferred_element_type=jnp.float32) + b
            return jnp.maximum(y, 0.0) if relu else y

        h = x_ref[...]                                # bf16 (tile_b, Din_p)
        li = 0
        for i in range(n_trunk):                      # ReLU on all but last layer
            h = linear(h, li, relu=(i < n_trunk - 1)); li += 1
        v = h
        for _ in range(n_v):                          # Identity activations
            v = linear(v, li, relu=False); li += 1
        pi = h
        for _ in range(n_pi):                         # Identity activations
            pi = linear(pi, li, relu=False); li += 1

        # 1/temperature already folded into the last layer of each head.
        log_pi_ref[...] = _log_softmax_f32(pi)
        log_v_ref[...] = _log_softmax_f32(v)

    return kernel


@functools.partial(jax.jit, static_argnums=(2, 3, 4, 5, 6, 7))
def _fused_forward(x, packed, n_trunk, n_v, n_pi, tile_b, pi_out_p, v_out_p):
    b_pad, din_p = x.shape
    grid = (b_pad // tile_b,)

    flat = []
    in_specs = [pl.BlockSpec((tile_b, din_p), lambda i: (i, 0))]
    for (w, b) in packed:
        flat += [w, b]
        in_specs.append(pl.BlockSpec(w.shape, lambda i: (0, 0)))   # resident weights
        in_specs.append(pl.BlockSpec(b.shape, lambda i: (0, 0)))   # resident biases

    out_shape = (jax.ShapeDtypeStruct((b_pad, pi_out_p), jnp.float32),
                 jax.ShapeDtypeStruct((b_pad, v_out_p), jnp.float32))
    out_specs = (pl.BlockSpec((tile_b, pi_out_p), lambda i: (i, 0)),
                 pl.BlockSpec((tile_b, v_out_p), lambda i: (i, 0)))

    return pl.pallas_call(
        _make_fused_kernel(n_trunk, n_v, n_pi),
        grid=grid,
        in_specs=in_specs,
        out_specs=out_specs,
        out_shape=out_shape,
        compiler_params=pltpu.CompilerParams(
            dimension_semantics=("parallel",),        # shard batch tiles across TCs
            vmem_limit_bytes=48 * 1024 * 1024,        # explicit; under v7x 64 MiB
        ),
    )(x, *flat)


# ----------------------------------------------------------------------------
# Parameter construction (deterministic, PyTorch nn.Linear-style uniform init)
# ----------------------------------------------------------------------------
def init_mlp(key, sizes):
    """PyTorch-style init; weights stored (out, in) like nn.Linear."""
    params = []
    for i in range(len(sizes) - 1):
        key, kw, kb = jax.random.split(key, 3)
        bound = 1.0 / np.sqrt(sizes[i])
        w = jax.random.uniform(kw, (sizes[i + 1], sizes[i]), jnp.float32, -bound, bound)
        b = jax.random.uniform(kb, (sizes[i + 1],), jnp.float32, -bound, bound)
        params.append((w, b))
    return key, params


def _pack_mlp(raw_params, final_softmax, inv_temp):
    """Transpose to (Din, Dout), lane-pad dims to multiples of 128, fold the
    1/temperature scale into the final layer, cast weights to bf16 (f32 biases).
    Padded softmax lanes get a -1e30 bias so exp() kills them in the epilogue."""
    packed = []
    n = len(raw_params)
    for i, (w, b) in enumerate(raw_params):
        dout, din = w.shape
        din_p, dout_p = _round_up(din, _LANE), _round_up(dout, _LANE)
        is_final = i == n - 1
        scale = inv_temp if is_final else 1.0
        wt = jnp.transpose(w) * scale                                    # (Din, Dout)
        w_p = jnp.zeros((din_p, dout_p), jnp.float32).at[:din, :dout].set(wt)
        pad_bias = _NEG_BIG if (final_softmax and is_final) else 0.0
        b_p = jnp.full((1, dout_p), pad_bias, jnp.float32).at[0, :dout].set(b * scale)
        packed.append((w_p.astype(jnp.bfloat16), b_p))
    return packed


class FullyConnectedPallas:
    def __init__(self, observation_size, input_fc_layers, value_dense_layers,
                 policy_dense_layers, action_size, num_players, has_draw,
                 value_softmax_temperature, policy_softmax_temperature, key):
        self.input_size = int(np.prod(observation_size))
        self.action_size = int(action_size)
        self.v_out = int(num_players) + int(has_draw)
        self.vst = float(value_softmax_temperature)
        self.pst = float(policy_softmax_temperature)

        trunk_sizes = [self.input_size] + list(input_fc_layers) + [input_fc_layers[-1]]
        v_sizes = [input_fc_layers[-1]] + list(value_dense_layers) + [self.v_out]
        pi_sizes = [input_fc_layers[-1]] + list(policy_dense_layers) + [self.action_size]

        key, self.trunk_raw = init_mlp(key, trunk_sizes)
        key, self.v_raw = init_mlp(key, v_sizes)
        key, self.pi_raw = init_mlp(key, pi_sizes)
        self.n_trunk, self.n_v, self.n_pi = (len(self.trunk_raw), len(self.v_raw),
                                             len(self.pi_raw))

        self.din_p = _round_up(self.input_size, _LANE)
        self.pi_out_p = _round_up(self.action_size, _LANE)
        self.v_out_p = _round_up(self.v_out, _LANE)

        # Kernel-ready params built ONCE here (pre-transposed, padded, bf16, scaled).
        self.packed = (_pack_mlp(self.trunk_raw, False, 1.0)
                       + _pack_mlp(self.v_raw, True, 1.0 / self.vst)
                       + _pack_mlp(self.pi_raw, True, 1.0 / self.pst))

    def forward(self, s):
        x = jnp.asarray(s, jnp.float32).reshape(-1, self.input_size)   # s.view(-1, D)
        b = x.shape[0]
        if self.din_p != self.input_size:                              # lane-pad features
            x = jnp.pad(x, ((0, 0), (0, self.din_p - self.input_size)))
        tile_b = min(_MAX_BATCH_TILE, _round_up(b, _SUBLANE))
        b_pad = _round_up(b, tile_b)
        if b_pad != b:                                                 # sublane-pad batch
            x = jnp.pad(x, ((0, b_pad - b), (0, 0)))
        x = x.astype(jnp.bfloat16)        # bf16 matmul operand; f32 accumulate in kernel

        log_pi_p, log_v_p = _fused_forward(
            x, self.packed, self.n_trunk, self.n_v, self.n_pi,
            tile_b, self.pi_out_p, self.v_out_p)
        return log_pi_p[:b, :self.action_size], log_v_p[:b, :self.v_out]


# ----------------------------------------------------------------------------
# References for correctness checks
# ----------------------------------------------------------------------------
def _ref_forward_exact(model, s):
    """Plain-JAX replica of the kernel math (same padded/scaled bf16 params)."""
    x = jnp.asarray(s, jnp.float32).reshape(-1, model.input_size)
    if model.din_p != model.input_size:
        x = jnp.pad(x, ((0, 0), (0, model.din_p - model.input_size)))
    h = x.astype(jnp.bfloat16)

    def linear(h, li, relu):
        w, bias = model.packed[li]
        y = jnp.dot(h.astype(jnp.bfloat16), w, preferred_element_type=jnp.float32) + bias
        return jnp.maximum(y, 0.0) if relu else y

    li = 0
    for i in range(model.n_trunk):
        h = linear(h, li, relu=(i < model.n_trunk - 1)); li += 1
    v = h
    for _ in range(model.n_v):
        v = linear(v, li, False); li += 1
    pi = h
    for _ in range(model.n_pi):
        pi = linear(pi, li, False); li += 1
    return (_log_softmax_f32(pi)[:, :model.action_size],
            _log_softmax_f32(v)[:, :model.v_out])


def _ref_forward_f32(model, s):
    """PyTorch-semantics f32 reference (unpadded, unscaled weights)."""
    def run(h, params, relu):
        n = len(params)
        for i, (w, b) in enumerate(params):
            h = h @ w.T + b
            if relu and i < n - 1:
                h = jnp.maximum(h, 0.0)
        return h

    x = jnp.asarray(s, jnp.float32).reshape(-1, model.input_size)
    h = run(x, model.trunk_raw, True)
    v = run(h, model.v_raw, False)
    pi = run(h, model.pi_raw, False)
    return (jax.nn.log_softmax(pi / model.pst, axis=1),
            jax.nn.log_softmax(v / model.vst, axis=1))


if __name__ == "__main__":
    key = jax.random.PRNGKey(0)
    key, kx, kp = jax.random.split(key, 3)

    # Small, module-consistent config.
    observation_size = (4, 16, 16)      # -> input_size = 1024
    batch = 2
    input_fc_layers = [128, 128]
    value_dense_layers = [64]
    policy_dense_layers = [128]
    action_size = 64
    num_players, has_draw = 2, 1        # value head output = 3
    vst, pst = 1.4, 1.1

    model = FullyConnectedPallas(
        observation_size, input_fc_layers, value_dense_layers,
        policy_dense_layers, action_size, num_players, has_draw,
        value_softmax_temperature=vst, policy_softmax_temperature=pst, key=kp)

    x = jax.random.normal(kx, (batch,) + observation_size, dtype=jnp.float32)  # NCHW

    log_pi, log_v = model.forward(x)
    jax.block_until_ready((log_pi, log_v))

    assert log_pi.shape == (batch, action_size)
    assert log_v.shape == (batch, num_players + has_draw)

    # Exact-math reference (same bf16 padded/scaled params, plain JAX).
    ref_pi, ref_v = _ref_forward_exact(model, x)
    np.testing.assert_allclose(np.asarray(log_pi), np.asarray(ref_pi), rtol=5e-3, atol=5e-3)
    np.testing.assert_allclose(np.asarray(log_v), np.asarray(ref_v), rtol=5e-3, atol=5e-3)

    # PyTorch-semantics f32 reference (loose tolerance: bf16 matmul operands).
    f32_pi, f32_v = _ref_forward_f32(model, x)
    np.testing.assert_allclose(np.asarray(log_pi), np.asarray(f32_pi), rtol=5e-2, atol=5e-2)
    np.testing.assert_allclose(np.asarray(log_v), np.asarray(f32_v), rtol=5e-2, atol=5e-2)

    print("KERNEL_OK")
</pallas_src>

<mosaic_0001>
module attributes {stable_mosaic.version = 11 : i64} {
  func.func @kernel(%arg0: i32, %arg1: memref<8x1024xbf16, #tpu.memory_space<vmem>>, %arg2: memref<1024x128xbf16, #tpu.memory_space<vmem>>, %arg3: memref<1x128xf32, #tpu.memory_space<vmem>>, %arg4: memref<128x128xbf16, #tpu.memory_space<vmem>>, %arg5: memref<1x128xf32, #tpu.memory_space<vmem>>, %arg6: memref<128x128xbf16, #tpu.memory_space<vmem>>, %arg7: memref<1x128xf32, #tpu.memory_space<vmem>>, %arg8: memref<128x128xbf16, #tpu.memory_space<vmem>>, %arg9: memref<1x128xf32, #tpu.memory_space<vmem>>, %arg10: memref<128x128xbf16, #tpu.memory_space<vmem>>, %arg11: memref<1x128xf32, #tpu.memory_space<vmem>>, %arg12: memref<128x128xbf16, #tpu.memory_space<vmem>>, %arg13: memref<1x128xf32, #tpu.memory_space<vmem>>, %arg14: memref<128x128xbf16, #tpu.memory_space<vmem>>, %arg15: memref<1x128xf32, #tpu.memory_space<vmem>>, %arg16: memref<8x128xf32, #tpu.memory_space<vmem>>, %arg17: memref<8x128xf32, #tpu.memory_space<vmem>>) attributes {dimension_semantics = [#tpu.dimension_semantics<parallel>], iteration_bounds = array<i64: 1>, scalar_prefetch = 0 : i64, scratch_operands = 0 : i64, tpu.core_type = #tpu.core_type<tc>, window_params = [{transform_indices = @transform_0, window_bounds = array<i64: 8, 1024>}, {pipeline_mode = #tpu.pipeline_mode<synchronous>, transform_indices = @transform_1, window_bounds = array<i64: 1024, 128>}, {pipeline_mode = #tpu.pipeline_mode<synchronous>, transform_indices = @transform_2, window_bounds = array<i64: 1, 128>}, {pipeline_mode = #tpu.pipeline_mode<synchronous>, transform_indices = @transform_3, window_bounds = array<i64: 128, 128>}, {pipeline_mode = #tpu.pipeline_mode<synchronous>, transform_indices = @transform_4, window_bounds = array<i64: 1, 128>}, {pipeline_mode = #tpu.pipeline_mode<synchronous>, transform_indices = @transform_5, window_bounds = array<i64: 128, 128>}, {pipeline_mode = #tpu.pipeline_mode<synchronous>, transform_indices = @transform_6, window_bounds = array<i64: 1, 128>}, {pipeline_mode = #tpu.pipeline_mode<synchronous>, transform_indices = @transform_7, window_bounds = array<i64: 128, 128>}, {pipeline_mode = #tpu.pipeline_mode<synchronous>, transform_indices = @transform_8, window_bounds = array<i64: 1, 128>}, {pipeline_mode = #tpu.pipeline_mode<synchronous>, transform_indices = @transform_9, window_bounds = array<i64: 128, 128>}, {pipeline_mode = #tpu.pipeline_mode<synchronous>, transform_indices = @transform_10, window_bounds = array<i64: 1, 128>}, {pipeline_mode = #tpu.pipeline_mode<synchronous>, transform_indices = @transform_11, window_bounds = array<i64: 128, 128>}, {pipeline_mode = #tpu.pipeline_mode<synchronous>, transform_indices = @transform_12, window_bounds = array<i64: 1, 128>}, {pipeline_mode = #tpu.pipeline_mode<synchronous>, transform_indices = @transform_13, window_bounds = array<i64: 128, 128>}, {pipeline_mode = #tpu.pipeline_mode<synchronous>, transform_indices = @transform_14, window_bounds = array<i64: 1, 128>}, {transform_indices = @transform_15, window_bounds = array<i64: 8, 128>}, {transform_indices = @transform_16, window_bounds = array<i64: 8, 128>}]} {
    %c0 = arith.constant 0 : index
    %c0_0 = arith.constant 0 : index
    %0 = vector.load %arg1[%c0, %c0_0] : memref<8x1024xbf16, #tpu.memory_space<vmem>>, vector<8x1024xbf16>
    %c0_1 = arith.constant 0 : index
    %c0_2 = arith.constant 0 : index
    %1 = vector.load %arg2[%c0_1, %c0_2] : memref<1024x128xbf16, #tpu.memory_space<vmem>>, vector<1024x128xbf16>
    %c0_3 = arith.constant 0 : index
    %c0_4 = arith.constant 0 : index
    %2 = vector.load %arg3[%c0_3, %c0_4] : memref<1x128xf32, #tpu.memory_space<vmem>>, vector<1x128xf32>
    %cst = arith.constant dense<0.000000e+00> : vector<8x128xf32>
    %3 = tpu.matmul %0, %1, %cst {dimension_numbers = #tpu.dot_dimension_numbers<[1], [0], [0], [1], [0, 0, 1, 1], [], []>} : vector<8x1024xbf16>, vector<1024x128xbf16>, vector<8x128xf32> -> vector<8x128xf32>
    %4 = vector.broadcast %2 : vector<1x128xf32> to vector<8x128xf32>
    %5 = arith.addf %3, %4 : vector<8x128xf32>
    %cst_5 = arith.constant 0.000000e+00 : f32
    %6 = vector.broadcast %cst_5 : f32 to vector<8x128xf32>
    %7 = arith.maximumf %5, %6 : vector<8x128xf32>
    %c0_6 = arith.constant 0 : index
    %c0_7 = arith.constant 0 : index
    %8 = vector.load %arg4[%c0_6, %c0_7] : memref<128x128xbf16, #tpu.memory_space<vmem>>, vector<128x128xbf16>
    %c0_8 = arith.constant 0 : index
    %c0_9 = arith.constant 0 : index
    %9 = vector.load %arg5[%c0_8, %c0_9] : memref<1x128xf32, #tpu.memory_space<vmem>>, vector<1x128xf32>
    %10 = arith.truncf %7 : vector<8x128xf32> to vector<8x128xbf16>
    %cst_10 = arith.constant dense<0.000000e+00> : vector<8x128xf32>
    %11 = tpu.matmul %10, %8, %cst_10 {dimension_numbers = #tpu.dot_dimension_numbers<[1], [0], [0], [1], [0, 0, 1, 1], [], []>} : vector<8x128xbf16>, vector<128x128xbf16>, vector<8x128xf32> -> vector<8x128xf32>
    %12 = vector.broadcast %9 : vector<1x128xf32> to vector<8x128xf32>
    %13 = arith.addf %11, %12 : vector<8x128xf32>
    %cst_11 = arith.constant 0.000000e+00 : f32
    %14 = vector.broadcast %cst_11 : f32 to vector<8x128xf32>
    %15 = arith.maximumf %13, %14 : vector<8x128xf32>
    %c0_12 = arith.constant 0 : index
    %c0_13 = arith.constant 0 : index
    %16 = vector.load %arg6[%c0_12, %c0_13] : memref<128x128xbf16, #tpu.memory_space<vmem>>, vector<128x128xbf16>
    %c0_14 = arith.constant 0 : index
    %c0_15 = arith.constant 0 : index
    %17 = vector.load %arg7[%c0_14, %c0_15] : memref<1x128xf32, #tpu.memory_space<vmem>>, vector<1x128xf32>
    %18 = arith.truncf %15 : vector<8x128xf32> to vector<8x128xbf16>
    %cst_16 = arith.constant dense<0.000000e+00> : vector<8x128xf32>
    %19 = tpu.matmul %18, %16, %cst_16 {dimension_numbers = #tpu.dot_dimension_numbers<[1], [0], [0], [1], [0, 0, 1, 1], [], []>} : vector<8x128xbf16>, vector<128x128xbf16>, vector<8x128xf32> -> vector<8x128xf32>
    %20 = vector.broadcast %17 : vector<1x128xf32> to vector<8x128xf32>
    %21 = arith.addf %19, %20 : vector<8x128xf32>
    %c0_17 = arith.constant 0 : index
    %c0_18 = arith.constant 0 : index
    %22 = vector.load %arg8[%c0_17, %c0_18] : memref<128x128xbf16, #tpu.memory_space<vmem>>, vector<128x128xbf16>
    %c0_19 = arith.constant 0 : index
    %c0_20 = arith.constant 0 : index
    %23 = vector.load %arg9[%c0_19, %c0_20] : memref<1x128xf32, #tpu.memory_space<vmem>>, vector<1x128xf32>
    %24 = arith.truncf %21 : vector<8x128xf32> to vector<8x128xbf16>
    %cst_21 = arith.constant dense<0.000000e+00> : vector<8x128xf32>
    %25 = tpu.matmul %24, %22, %cst_21 {dimension_numbers = #tpu.dot_dimension_numbers<[1], [0], [0], [1], [0, 0, 1, 1], [], []>} : vector<8x128xbf16>, vector<128x128xbf16>, vector<8x128xf32> -> vector<8x128xf32>
    %26 = vector.broadcast %23 : vector<1x128xf32> to vector<8x128xf32>
    %27 = arith.addf %25, %26 : vector<8x128xf32>
    %c0_22 = arith.constant 0 : index
    %c0_23 = arith.constant 0 : index
    %28 = vector.load %arg10[%c0_22, %c0_23] : memref<128x128xbf16, #tpu.memory_space<vmem>>, vector<128x128xbf16>
    %c0_24 = arith.constant 0 : index
    %c0_25 = arith.constant 0 : index
    %29 = vector.load %arg11[%c0_24, %c0_25] : memref<1x128xf32, #tpu.memory_space<vmem>>, vector<1x128xf32>
    %30 = arith.truncf %27 : vector<8x128xf32> to vector<8x128xbf16>
    %cst_26 = arith.constant dense<0.000000e+00> : vector<8x128xf32>
    %31 = tpu.matmul %30, %28, %cst_26 {dimension_numbers = #tpu.dot_dimension_numbers<[1], [0], [0], [1], [0, 0, 1, 1], [], []>} : vector<8x128xbf16>, vector<128x128xbf16>, vector<8x128xf32> -> vector<8x128xf32>
    %32 = vector.broadcast %29 : vector<1x128xf32> to vector<8x128xf32>
    %33 = arith.addf %31, %32 : vector<8x128xf32>
    %c0_27 = arith.constant 0 : index
    %c0_28 = arith.constant 0 : index
    %34 = vector.load %arg12[%c0_27, %c0_28] : memref<128x128xbf16, #tpu.memory_space<vmem>>, vector<128x128xbf16>
    %c0_29 = arith.constant 0 : index
    %c0_30 = arith.constant 0 : index
    %35 = vector.load %arg13[%c0_29, %c0_30] : memref<1x128xf32, #tpu.memory_space<vmem>>, vector<1x128xf32>
    %36 = arith.truncf %21 : vector<8x128xf32> to vector<8x128xbf16>
    %cst_31 = arith.constant dense<0.000000e+00> : vector<8x128xf32>
    %37 = tpu.matmul %36, %34, %cst_31 {dimension_numbers = #tpu.dot_dimension_numbers<[1], [0], [0], [1], [0, 0, 1, 1], [], []>} : vector<8x128xbf16>, vector<128x128xbf16>, vector<8x128xf32> -> vector<8x128xf32>
    %38 = vector.broadcast %35 : vector<1x128xf32> to vector<8x128xf32>
    %39 = arith.addf %37, %38 : vector<8x128xf32>
    %c0_32 = arith.constant 0 : index
    %c0_33 = arith.constant 0 : index
    %40 = vector.load %arg14[%c0_32, %c0_33] : memref<128x128xbf16, #tpu.memory_space<vmem>>, vector<128x128xbf16>
    %c0_34 = arith.constant 0 : index
    %c0_35 = arith.constant 0 : index
    %41 = vector.load %arg15[%c0_34, %c0_35] : memref<1x128xf32, #tpu.memory_space<vmem>>, vector<1x128xf32>
    %42 = arith.truncf %39 : vector<8x128xf32> to vector<8x128xbf16>
    %cst_36 = arith.constant dense<0.000000e+00> : vector<8x128xf32>
    %43 = tpu.matmul %42, %40, %cst_36 {dimension_numbers = #tpu.dot_dimension_numbers<[1], [0], [0], [1], [0, 0, 1, 1], [], []>} : vector<8x128xbf16>, vector<128x128xbf16>, vector<8x128xf32> -> vector<8x128xf32>
    %44 = vector.broadcast %41 : vector<1x128xf32> to vector<8x128xf32>
    %45 = arith.addf %43, %44 : vector<8x128xf32>
    %cst_37 = arith.constant dense<0xFF800000> : vector<8xf32>
    %46 = vector.multi_reduction <maximumf>, %45, %cst_37 [1] : vector<8x128xf32> to vector<8xf32>
    %47 = vector.shape_cast %46 : vector<8xf32> to vector<8x1xf32>
    %48 = vector.broadcast %47 : vector<8x1xf32> to vector<8x128xf32>
    %49 = arith.subf %45, %48 : vector<8x128xf32>
    %50 = math.exp %49 : vector<8x128xf32>
    %51 = vector.broadcast %47 : vector<8x1xf32> to vector<8x128xf32>
    %52 = arith.subf %45, %51 : vector<8x128xf32>
    %cst_38 = arith.constant dense<0.000000e+00> : vector<8xf32>
    %53 = vector.multi_reduction <add>, %50, %cst_38 [1] : vector<8x128xf32> to vector<8xf32>
    %54 = vector.shape_cast %53 : vector<8xf32> to vector<8x1xf32>
    %55 = math.log %54 : vector<8x1xf32>
    %56 = vector.broadcast %55 : vector<8x1xf32> to vector<8x128xf32>
    %57 = arith.subf %52, %56 : vector<8x128xf32>
    %c0_39 = arith.constant 0 : index
    %c0_40 = arith.constant 0 : index
    %58 = vector.load %arg16[%c0_39, %c0_40] : memref<8x128xf32, #tpu.memory_space<vmem>>, vector<8x128xf32>
    tpu.vector_store %arg16[%c0_39, %c0_40], %57 {strides = array<i32>} : memref<8x128xf32, #tpu.memory_space<vmem>>, vector<8x128xf32>,
    %cst_41 = arith.constant dense<0xFF800000> : vector<8xf32>
    %59 = vector.multi_reduction <maximumf>, %33, %cst_41 [1] : vector<8x128xf32> to vector<8xf32>
    %60 = vector.shape_cast %59 : vector<8xf32> to vector<8x1xf32>
    %61 = vector.broadcast %60 : vector<8x1xf32> to vector<8x128xf32>
    %62 = arith.subf %33, %61 : vector<8x128xf32>
    %63 = math.exp %62 : vector<8x128xf32>
    %64 = vector.broadcast %60 : vector<8x1xf32> to vector<8x128xf32>
    %65 = arith.subf %33, %64 : vector<8x128xf32>
    %cst_42 = arith.constant dense<0.000000e+00> : vector<8xf32>
    %66 = vector.multi_reduction <add>, %63, %cst_42 [1] : vector<8x128xf32> to vector<8xf32>
    %67 = vector.shape_cast %66 : vector<8xf32> to vector<8x1xf32>
    %68 = math.log %67 : vector<8x1xf32>
    %69 = vector.broadcast %68 : vector<8x1xf32> to vector<8x128xf32>
    %70 = arith.subf %65, %69 : vector<8x128xf32>
    %c0_43 = arith.constant 0 : index
    %c0_44 = arith.constant 0 : index
    %71 = vector.load %arg17[%c0_43, %c0_44] : memref<8x128xf32, #tpu.memory_space<vmem>>, vector<8x128xf32>
    tpu.vector_store %arg17[%c0_43, %c0_44], %70 {strides = array<i32>} : memref<8x128xf32, #tpu.memory_space<vmem>>, vector<8x128xf32>,
    return
  }
  func.func @transform_0(%arg0: i32) -> (i32, i32) {
    %c0_i32 = arith.constant 0 : i32
    %c0_i32_0 = arith.constant 0 : i32
    return %arg0, %c0_i32 : i32, i32
  }
  func.func @transform_1(%arg0: i32) -> (i32, i32) {
    %c0_i32 = arith.constant 0 : i32
    %c0_i32_0 = arith.constant 0 : i32
    %c0_i32_1 = arith.constant 0 : i32
    return %c0_i32, %c0_i32_0 : i32, i32
  }
  func.func @transform_2(%arg0: i32) -> (i32, i32) {
    %c0_i32 = arith.constant 0 : i32
    %c0_i32_0 = arith.constant 0 : i32
    %c0_i32_1 = arith.constant 0 : i32
    return %c0_i32, %c0_i32_0 : i32, i32
  }
  func.func @transform_3(%arg0: i32) -> (i32, i32) {
    %c0_i32 = arith.constant 0 : i32
    %c0_i32_0 = arith.constant 0 : i32
    %c0_i32_1 = arith.constant 0 : i32
    return %c0_i32, %c0_i32_0 : i32, i32
  }
  func.func @transform_4(%arg0: i32) -> (i32, i32) {
    %c0_i32 = arith.constant 0 : i32
    %c0_i32_0 = arith.constant 0 : i32
    %c0_i32_1 = arith.constant 0 : i32
    return %c0_i32, %c0_i32_0 : i32, i32
  }
  func.func @transform_5(%arg0: i32) -> (i32, i32) {
    %c0_i32 = arith.constant 0 : i32
    %c0_i32_0 = arith.constant 0 : i32
    %c0_i32_1 = arith.constant 0 : i32
    return %c0_i32, %c0_i32_0 : i32, i32
  }
  func.func @transform_6(%arg0: i32) -> (i32, i32) {
    %c0_i32 = arith.constant 0 : i32
    %c0_i32_0 = arith.constant 0 : i32
    %c0_i32_1 = arith.constant 0 : i32
    return %c0_i32, %c0_i32_0 : i32, i32
  }
  func.func @transform_7(%arg0: i32) -> (i32, i32) {
    %c0_i32 = arith.constant 0 : i32
    %c0_i32_0 = arith.constant 0 : i32
    %c0_i32_1 = arith.constant 0 : i32
    return %c0_i32, %c0_i32_0 : i32, i32
  }
  func.func @transform_8(%arg0: i32) -> (i32, i32) {
    %c0_i32 = arith.constant 0 : i32
    %c0_i32_0 = arith.constant 0 : i32
    %c0_i32_1 = arith.constant 0 : i32
    return %c0_i32, %c0_i32_0 : i32, i32
  }
  func.func @transform_9(%arg0: i32) -> (i32, i32) {
    %c0_i32 = arith.constant 0 : i32
    %c0_i32_0 = arith.constant 0 : i32
    %c0_i32_1 = arith.constant 0 : i32
    return %c0_i32, %c0_i32_0 : i32, i32
  }
  func.func @transform_10(%arg0: i32) -> (i32, i32) {
    %c0_i32 = arith.constant 0 : i32
    %c0_i32_0 = arith.constant 0 : i32
    %c0_i32_1 = arith.constant 0 : i32
    return %c0_i32, %c0_i32_0 : i32, i32
  }
  func.func @transform_11(%arg0: i32) -> (i32, i32) {
    %c0_i32 = arith.constant 0 : i32
    %c0_i32_0 = arith.constant 0 : i32
    %c0_i32_1 = arith.constant 0 : i32
    return %c0_i32, %c0_i32_0 : i32, i32
  }
  func.func @transform_12(%arg0: i32) -> (i32, i32) {
    %c0_i32 = arith.constant 0 : i32
    %c0_i32_0 = arith.constant 0 : i32
    %c0_i32_1 = arith.constant 0 : i32
    return %c0_i32, %c0_i32_0 : i32, i32
  }
  func.func @transform_13(%arg0: i32) -> (i32, i32) {
    %c0_i32 = arith.constant 0 : i32
    %c0_i32_0 = arith.constant 0 : i32
    %c0_i32_1 = arith.constant 0 : i32
    return %c0_i32, %c0_i32_0 : i32, i32
  }
  func.func @transform_14(%arg0: i32) -> (i32, i32) {
    %c0_i32 = arith.constant 0 : i32
    %c0_i32_0 = arith.constant 0 : i32
    %c0_i32_1 = arith.constant 0 : i32
    return %c0_i32, %c0_i32_0 : i32, i32
  }
  func.func @transform_15(%arg0: i32) -> (i32, i32) {
    %c0_i32 = arith.constant 0 : i32
    %c0_i32_0 = arith.constant 0 : i32
    return %arg0, %c0_i32 : i32, i32
  }
  func.func @transform_16(%arg0: i32) -> (i32, i32) {
    %c0_i32 = arith.constant 0 : i32
    %c0_i32_0 = arith.constant 0 : i32
    return %arg0, %c0_i32 : i32, i32
  }
}

</mosaic_0001>

<bundles_post_ra>
// kernel: _fused_forward.1
= control target key start
LH: loop header
LB: loop body
LE: loop exit
PB: predicated region body
PF: predicated region fallthrough
CT: control target
= control target key end

     0   :  { %s2391_s0 = inlined_call_operand.hbm [shape: bf16[8,1024], index: 0, kind: input, shape index: {}]   ;;  %s2392_s1 = inlined_call_operand.hbm [shape: bf16[1024,128], index: 1, kind: input, shape index: {}]   ;;  %s2393_s2 = inlined_call_operand.vmem [shape: f32[1,128], index: 2, kind: input, shape index: {}]   ;;  %s2394_s3 = inlined_call_operand.hbm [shape: bf16[128,128], index: 3, kind: input, shape index: {}]   ;;  %s2395_s4 = inlined_call_operand.vmem [shape: f32[1,128], index: 4, kind: input, shape index: {}]   ;;  %s2396_s5 = inlined_call_operand.hbm [shape: bf16[128,128], index: 5, kind: input, shape index: {}]   ;;  %s2397_s6 = inlined_call_operand.vmem [shape: f32[1,128], index: 6, kind: input, shape index: {}]   ;;  %s2398_s7 = inlined_call_operand.hbm [shape: bf16[128,128], index: 7, kind: input, shape index: {}]   ;;  %s2399_s8 = inlined_call_operand.vmem [shape: f32[1,128], index: 8, kind: input, shape index: {}]   ;;  %s2400_s9 = inlined_call_operand.hbm [shape: bf16[128,128], index: 9, kind: input, shape index: {}]   ;;  %s2401_s10 = inlined_call_operand.vmem [shape: f32[1,128], index: 10, kind: input, shape index: {}]   ;;  %s2402_s11 = inlined_call_operand.hbm [shape: bf16[128,128], index: 11, kind: input, shape index: {}]   ;;  %s2403_s12 = inlined_call_operand.vmem [shape: f32[1,128], index: 12, kind: input, shape index: {}]   ;;  %s2404_s13 = inlined_call_operand.hbm [shape: bf16[128,128], index: 13, kind: input, shape index: {}]   ;;  %s2405_s14 = inlined_call_operand.vmem [shape: f32[1,128], index: 14, kind: input, shape index: {}]   ;;  %s2406_s15 = inlined_call_operand.hbm [shape: f32[8,128], index: 15, kind: output, shape index: {0}]   ;;  %s2407_s16 = inlined_call_operand.hbm [shape: f32[8,128], index: 16, kind: output, shape index: {1}]  }
   0x1   :  { %2408 = sst [smem:[#allocation26_spill]] %s2391_s0 }
   0x2   :  { %22 = vsyncpa [#allocation3], 0 }
   0x3   :  { %23 = vsyncpa [#allocation6], 0 }
   0x4   :  { %24 = vsyncpa [#allocation9], 0 }
   0x5   :  { %25 = vsyncpa [#allocation12], 0 }
   0x6   :  { %26 = vsyncpa [#allocation15], 0 }
   0x7   :  { %27 = vsyncpa [#allocation4], 0  ;;  %s44_s23 = sshll.u32 %s2392_s1, 4  ;;  %s45_s23 = int_to_ptr.hbm [resolvable:$true] %s44_s23 }
   0x8   :  { %28 = vsyncpa [#allocation18], 0  ;;  %s2222_s24 = smov [#allocation5]   ;;  %s74_s28 = sshll.u32 %s2396_s5, 4  ;;  %s75_s28 = int_to_ptr.hbm [resolvable:$true] %s74_s28 }
   0x9   :  { %s46_s25 = sshll.u32 %s2222_s24, 4  ;;  %s2223_s29 = smov 64   ;;  %s47_s25 = int_to_ptr.vmem [resolvable:$true] %s46_s25 }
   0xa   :  { %s2224_s30 = smov 4   ;;  %s2225_s0 = smov [#allocation8]  }
   0xb   :  { %52 = dma.hbm_to_vmem [thread:$0]  %s45_s23, 8192, %s47_s25, [#allocation6], %s2223_s29, %s2223_s29, %s2224_s30  }
   0xc   :  { %s76_s17 = sshll.u32 %s2225_s0, 4  ;;  %s104_s19 = sshll.u32 %s2400_s9, 4  ;;  %s77_s17 = int_to_ptr.vmem [resolvable:$true] %s76_s17  ;;  %s105_s19 = int_to_ptr.hbm [resolvable:$true] %s104_s19 }
   0xd   :  { %82 = dma.hbm_to_vmem [thread:$0]  %s75_s28, 1024, %s77_s17, [#allocation9], %s2223_s29, %s2223_s29, %s2224_s30  }
   0xe   :  { %s2409_s21 = sld [smem:[#allocation26_spill]]  ;;  %s2226_s24 = smov [#allocation11]  }
   0xf   :  { %s106_s26 = sshll.u32 %s2226_s24, 4  ;;  %s2227_s23 = smov [#allocation2]   ;;  %s107_s26 = int_to_ptr.vmem [resolvable:$true] %s106_s26 }
  0x10   :  { %112 = dma.hbm_to_vmem [thread:$0]  %s105_s19, 1024, %s107_s26, [#allocation12], %s2223_s29, %s2223_s29, %s2224_s30  }
  0x11   :  { %s36_s9 = sshll.u32 %s2227_s23, 4  ;;  %s59_s0 = sshll.u32 %s2394_s3, 4  ;;  %s37_s9 = int_to_ptr.vmem [resolvable:$true] %s36_s9  ;;  %s60_s0 = int_to_ptr.hbm [resolvable:$true] %s59_s0 }
  0x12   :  { %s89_s18 = sshll.u32 %s2398_s7, 4  ;;  %s2228_s1 = smov [#allocation7]   ;;  %s90_s18 = int_to_ptr.hbm [resolvable:$true] %s89_s18 }
  0x13   :  { %s61_s5 = sshll.u32 %s2228_s1, 4  ;;  %s2229_s19 = smov [#allocation10]   ;;  %s62_s5 = int_to_ptr.vmem [resolvable:$true] %s61_s5 }
  0x14   :  { %s34_s22 = sshll.u32 %s2409_s21, 4  ;;  %s91_s20 = sshll.u32 %s2229_s19, 4  ;;  %s35_s22 = int_to_ptr.hbm [resolvable:$true] %s34_s22  ;;  %s92_s20 = int_to_ptr.vmem [resolvable:$true] %s91_s20 }
  0x15   :  { %39 = dma.hbm_to_vmem [thread:$0]  %s35_s22, 512, %s37_s9, [#allocation3]  }
  0x16   :  { %67 = dma.hbm_to_vmem [thread:$0]  %s60_s0, 1024, %s62_s5, [#allocation6], %s2223_s29, %s2223_s29, %s2224_s30  }
  0x17   :  { %s119_s3 = sshll.u32 %s2402_s11, 4  ;;  %s134_s26 = sshll.u32 %s2404_s13, 4  ;;  %s120_s3 = int_to_ptr.hbm [resolvable:$true] %s119_s3  ;;  %s135_s26 = int_to_ptr.hbm [resolvable:$true] %s134_s26 }
  0x18   :  { %97 = dma.hbm_to_vmem [thread:$0]  %s90_s18, 1024, %s92_s20, [#allocation9], %s2223_s29, %s2223_s29, %s2224_s30  }
  0x19   :  { %s2230_s23 = smov [#allocation13]   ;;  %s2231_s25 = smov [#allocation14]  }
  0x1a   :  { %s121_s9 = sshll.u32 %s2230_s23, 4  ;;  %s136_s11 = sshll.u32 %s2231_s25, 4  ;;  %s122_s9 = int_to_ptr.vmem [resolvable:$true] %s121_s9  ;;  %s137_s11 = int_to_ptr.vmem [resolvable:$true] %s136_s11 }
  0x1b   :  { %127 = dma.hbm_to_vmem [thread:$0]  %s120_s3, 1024, %s122_s9, [#allocation12], %s2223_s29, %s2223_s29, %s2224_s30  }
  0x1c   :  { %142 = dma.hbm_to_vmem [thread:$0]  %s135_s26, 1024, %s137_s11, [#allocation15], %s2223_s29, %s2223_s29, %s2224_s30  }
  0x1d   :  { %2208 = dma.done.wait [#allocation3], 512  }
  0x1e   :  { %2209 = vsyncadd [#allocation3], 4294966784 }
  0x1f   :  { %2210 = dma.done.wait [#allocation6], 9216  }
  0x20   :  { %2211 = vsyncadd [#allocation6], 4294958080 }
  0x21   :  { %2212 = dma.done.wait [#allocation9], 2048  }
  0x22   :  { %2213 = vsyncadd [#allocation9], 4294965248 }
  0x23   :  { %2214 = dma.done.wait [#allocation12], 2048  }
  0x24   :  { %2215 = vsyncadd [#allocation12], 4294965248 }
  0x25   :  { %2216 = dma.done.wait [#allocation15], 1024  }
  0x26   :  { %2217 = vsyncadd [#allocation15], 4294966272  ;;  %v1836_v0 = vld [vmem:[#allocation5 + $0x38] sm:$0xff]  ;;  %v1835_v4 = vld [vmem:[#allocation5 + $0x30] sm:$0xff]  ;;  %s1351_s20 = sshll.u32 %s2406_s15, 4  ;;  %s2233_s21 = smov [#allocation17]   ;;  %s1352_s20 = int_to_ptr.hbm [resolvable:$true] %s1351_s20 }
  0x27   :  { %v1844_v1 = vld [vmem:[#allocation5 + $0x78] sm:$0xff]  ;;  %725 = vmatpush.bf16.msra.mxu0 %v1836_v0  ;;  %v1843_v5 = vld [vmem:[#allocation5 + $0x70] sm:$0xff]  ;;  %v1834_v8 = vld [vmem:[#allocation5 + $0x28] sm:$0xff]  ;;  %s1360_s24 = sshll.u32 %s2233_s21, 4  ;;  %s1362_s22 = sshll.u32 %s2407_s16, 4  ;;  %s1361_s24 = int_to_ptr.vmem [resolvable:$true] %s1360_s24  ;;  %s1363_s22 = int_to_ptr.hbm [resolvable:$true] %s1362_s22 }
  0x28   :  { %v1852_v2 = vld [vmem:[#allocation5 + $0xb8] sm:$0xff]  ;;  %738 = vmatpush.bf16.msra.mxu1 %v1844_v1  ;;  %v1851_v6 = vld [vmem:[#allocation5 + $0xb0] sm:$0xff]  ;;  %v1842_v9 = vld [vmem:[#allocation5 + $0x68] sm:$0xff] }
  0x29   :  { %v1860_v3 = vld [vmem:[#allocation5 + $0xf8] sm:$0xff]  ;;  %751 = vmatpush.bf16.msra.mxu2 %v1852_v2  ;;  %v1859_v7 = vld [vmem:[#allocation5 + $0xf0] sm:$0xff]  ;;  %v1850_v10 = vld [vmem:[#allocation5 + $0xa8] sm:$0xff] }
  0x2a   :  { %764 = vmatpush.bf16.msra.mxu3 %v1860_v3  ;;  %v1858_v11 = vld [vmem:[#allocation5 + $0xe8] sm:$0xff]  ;;  %v1833_v12 = vld [vmem:[#allocation5 + $0x20] sm:$0xff]  ;;  %v1832_v16 = vld [vmem:[#allocation5 + $0x18] sm:$0xff] }
  0x2b   :  { %726 = vmatpush.bf16.msra.mxu0 %v1835_v4  ;;  %v1841_v13 = vld [vmem:[#allocation5 + $0x60] sm:$0xff]  ;;  %v1840_v17 = vld [vmem:[#allocation5 + $0x58] sm:$0xff]  ;;  %v1831_v20 = vld [vmem:[#allocation5 + $0x10] sm:$0xff] }
  0x2c   :  { %739 = vmatpush.bf16.msra.mxu1 %v1843_v5  ;;  %v1849_v14 = vld [vmem:[#allocation5 + $0xa0] sm:$0xff]  ;;  %v1848_v18 = vld [vmem:[#allocation5 + $0x98] sm:$0xff]  ;;  %v1839_v21 = vld [vmem:[#allocation5 + $0x50] sm:$0xff] }
  0x2d   :  { %752 = vmatpush.bf16.msra.mxu2 %v1851_v6  ;;  %v1857_v15 = vld [vmem:[#allocation5 + $0xe0] sm:$0xff]  ;;  %v1856_v19 = vld [vmem:[#allocation5 + $0xd8] sm:$0xff]  ;;  %v1847_v22 = vld [vmem:[#allocation5 + $0x90] sm:$0xff] }
  0x2e   :  { %765 = vmatpush.bf16.msra.mxu3 %v1859_v7  ;;  %v1855_v23 = vld [vmem:[#allocation5 + $0xd0] sm:$0xff]  ;;  %v1830_v24 = vld [vmem:[#allocation5 + $0x8] sm:$0xff]  ;;  %v177_v29 = vld [vmem:[#allocation2] sm:$0xff] }
  0x2f   :  { %727 = vmatpush.bf16.msra.mxu0 %v1834_v8  ;;  %v1838_v25 = vld [vmem:[#allocation5 + $0x48] sm:$0xff]  ;;  %v1829_v30 = vld [vmem:[#allocation5] sm:$0xff]  ;;  %v317_v33 = vunpack.c.l.b16 %v177_v29  ;;  %v318_v37 = vunpack.c.h.b16 %v177_v29  ;;  %v1868_v38 = vld [vmem:[#allocation5 + $0x138] sm:$0xff] }
  0x30   :  { %740 = vmatpush.bf16.msra.mxu1 %v1842_v9  ;;  %v1846_v26 = vld [vmem:[#allocation5 + $0x88] sm:$0xff]  ;;  %v1837_v31 = vld [vmem:[#allocation5 + $0x40] sm:$0xff]  ;;  %v1876_v39 = vld [vmem:[#allocation5 + $0x178] sm:$0xff] }
  0x31   :  { %753 = vmatpush.bf16.msra.mxu2 %v1850_v10  ;;  %v1854_v27 = vld [vmem:[#allocation5 + $0xc8] sm:$0xff]  ;;  %v1845_v34 = vld [vmem:[#allocation5 + $0x80] sm:$0xff]  ;;  %v1884_v40 = vld [vmem:[#allocation5 + $0x1b8] sm:$0xff]  ;;  %v325_v43 = vpack.c.b16 %v317_v33, %v317_v33  ;;  %v326_v45 = vpack.c.b16 %v318_v37, %v318_v37 }
  0x32   :  { %766 = vmatpush.bf16.msra.mxu3 %v1858_v11  ;;  %v178_v28 = vld [vmem:[#allocation2 + $0x8] sm:$0xff]  ;;  %v1853_v35 = vld [vmem:[#allocation5 + $0xc0] sm:$0xff]  ;;  %v1892_v41 = vld [vmem:[#allocation5 + $0x1f8] sm:$0xff] }
  0x33   :  { %728 = vmatpush.bf16.msra.mxu0 %v1833_v12  ;;  %v319_v32 = vunpack.c.l.b16 %v178_v28  ;;  %v320_v36 = vunpack.c.h.b16 %v178_v28  ;;  %v1867_v46 = vld [vmem:[#allocation5 + $0x130] sm:$0xff]  ;;  %v1866_v50 = vld [vmem:[#allocation5 + $0x128] sm:$0xff]  ;;  %v1865_v54 = vld [vmem:[#allocation5 + $0x120] sm:$0xff] }
  0x34   :  { %741 = vmatpush.bf16.msra.mxu1 %v1841_v13  ;;  %v1875_v47 = vld [vmem:[#allocation5 + $0x170] sm:$0xff]  ;;  %v1874_v51 = vld [vmem:[#allocation5 + $0x168] sm:$0xff]  ;;  %v1873_v55 = vld [vmem:[#allocation5 + $0x160] sm:$0xff] }
  0x35   :  { %754 = vmatpush.bf16.msra.mxu2 %v1849_v14  ;;  %v327_v42 = vpack.c.b16 %v319_v32, %v319_v32  ;;  %v328_v44 = vpack.c.b16 %v320_v36, %v320_v36  ;;  %v1883_v48 = vld [vmem:[#allocation5 + $0x1b0] sm:$0xff]  ;;  %v1882_v52 = vld [vmem:[#allocation5 + $0x1a8] sm:$0xff]  ;;  %v1881_v56 = vld [vmem:[#allocation5 + $0x1a0] sm:$0xff] }
  0x36   :  { %767 = vmatpush.bf16.msra.mxu3 %v1857_v15  ;;  %v1891_v49 = vld [vmem:[#allocation5 + $0x1f0] sm:$0xff]  ;;  %v1890_v53 = vld [vmem:[#allocation5 + $0x1e8] sm:$0xff]  ;;  %v1889_v57 = vld [vmem:[#allocation5 + $0x1e0] sm:$0xff] }
  0x37   :  { %729 = vmatpush.bf16.msra.mxu0 %v1832_v16  ;;  %v1864_v58 = vld [vmem:[#allocation5 + $0x118] sm:$0xff]  ;;  %v1863_v62 = vld [vmem:[#allocation5 + $0x110] sm:$0xff]  ;;  %v1862_v2 = vld [vmem:[#allocation5 + $0x108] sm:$0xff] }
  0x38   :  { %742 = vmatpush.bf16.msra.mxu1 %v1840_v17  ;;  %v1872_v59 = vld [vmem:[#allocation5 + $0x158] sm:$0xff]  ;;  %v1871_v63 = vld [vmem:[#allocation5 + $0x150] sm:$0xff]  ;;  %v1870_v3 = vld [vmem:[#allocation5 + $0x148] sm:$0xff] }
  0x39   :  { %755 = vmatpush.bf16.msra.mxu2 %v1848_v18  ;;  %v1880_v60 = vld [vmem:[#allocation5 + $0x198] sm:$0xff]  ;;  %v1879_v0 = vld [vmem:[#allocation5 + $0x190] sm:$0xff]  ;;  %v1878_v5 = vld [vmem:[#allocation5 + $0x188] sm:$0xff] }
  0x3a   :  { %768 = vmatpush.bf16.msra.mxu3 %v1856_v19  ;;  %v1888_v61 = vld [vmem:[#allocation5 + $0x1d8] sm:$0xff]  ;;  %v1887_v1 = vld [vmem:[#allocation5 + $0x1d0] sm:$0xff]  ;;  %v1886_v6 = vld [vmem:[#allocation5 + $0x1c8] sm:$0xff] }
  0x3b   :  { %730 = vmatpush.bf16.msra.mxu0 %v1831_v20  ;;  %v179_v4 = vld [vmem:[#allocation2 + $0x10] sm:$0xff]  ;;  %v180_v7 = vld [vmem:[#allocation2 + $0x18] sm:$0xff]  ;;  %v1861_v10 = vld [vmem:[#allocation5 + $0x100] sm:$0xff] }
  0x3c   :  { %743 = vmatpush.bf16.msra.mxu1 %v1839_v21  ;;  %v321_v8 = vunpack.c.l.b16 %v179_v4  ;;  %v322_v9 = vunpack.c.h.b16 %v179_v4  ;;  %v1869_v11 = vld [vmem:[#allocation5 + $0x140] sm:$0xff]  ;;  %v323_v12 = vunpack.c.l.b16 %v180_v7  ;;  %v324_v13 = vunpack.c.h.b16 %v180_v7  ;;  %v1900_v20 = vld [vmem:[#allocation7 + $0x38] sm:$0xff]  ;;  %v1899_v21 = vld [vmem:[#allocation7 + $0x30] sm:$0xff] }
  0x3d   :  { %756 = vmatpush.bf16.msra.mxu2 %v1847_v22  ;;  %v1877_v14 = vld [vmem:[#allocation5 + $0x180] sm:$0xff]  ;;  %v1898_v22 = vld [vmem:[#allocation7 + $0x28] sm:$0xff]  ;;  %v1912_v7 = vld [vmem:[#allocation10 + $0x18] sm:$0xff] }
  0x3e   :  { %769 = vmatpush.bf16.msra.mxu3 %v1855_v23  ;;  %v1885_v15 = vld [vmem:[#allocation5 + $0x1c0] sm:$0xff]  ;;  %v329_v16 = vpack.c.b16 %v321_v8, %v321_v8  ;;  %v330_v17 = vpack.c.b16 %v322_v9, %v322_v9  ;;  %v331_v18 = vpack.c.b16 %v323_v12, %v323_v12  ;;  %v332_v19 = vpack.c.b16 %v324_v13, %v324_v13  ;;  %v1894_v28 = vld [vmem:[#allocation7 + $0x8] sm:$0xff]  ;;  %v1928_v8 = vld [vmem:[#allocation13 + $0x18] sm:$0xff] }
  0x3f   :  { %731 = vmatpush.bf16.msra.mxu0 %v1830_v24  ;;  %v1897_v23 = vld [vmem:[#allocation7 + $0x20] sm:$0xff]  ;;  %v1896_v24 = vld [vmem:[#allocation7 + $0x18] sm:$0xff]  ;;  %v1930_v4 = vld [vmem:[#allocation13 + $0x28] sm:$0xff] }
  0x40   :  { %744 = vmatpush.bf16.msra.mxu1 %v1838_v25  ;;  %v1893_v32 = vld [vmem:[#allocation7] sm:$0xff]  ;;  %v1911_v9 = vld [vmem:[#allocation10 + $0x10] sm:$0xff]  ;;  %v1910_v12 = vld [vmem:[#allocation10 + $0x8] sm:$0xff] }
  0x41   :  { %757 = vmatpush.bf16.msra.mxu2 %v1846_v26  ;;  %v1895_v26 = vld [vmem:[#allocation7 + $0x10] sm:$0xff]  ;;  %v1926_v13 = vld [vmem:[#allocation13 + $0x8] sm:$0xff] }
  0x42   :  { %770 = vmatpush.bf16.msra.mxu3 %v1854_v27 }
  0x43   :  { %732 = vmatpush.bf16.msra.mxu0 %v1829_v30 }
  0x44   :  { %745 = vmatpush.bf16.msra.mxu1 %v1837_v31 }
  0x45   :  { %758 = vmatpush.bf16.msra.mxu2 %v1845_v34  ;;  %v1953_v34 = vld [vmem:[%s2393_s2] ss:$0 sm:$0xff] }
  0x46   :  { %771 = vmatpush.bf16.msra.mxu3 %v1853_v35  ;;  %733 = vmatmul.bf16.vlgmr.msra.gmra.mxu0 %v325_v43  ;;  %v1908_v35 = vld [vmem:[#allocation8 + $0x38] sm:$0xff] }
  0x47   :  { %777 = vmatpush.bf16.msrb.mxu0 %v1868_v38  ;;  %746 = vmatmul.bf16.vlgmr.msra.gmra.mxu1 %v326_v45  ;;  %v1907_v38 = vld [vmem:[#allocation8 + $0x30] sm:$0xff] }
  0x48   :  { %790 = vmatpush.bf16.msrb.mxu1 %v1876_v39  ;;  %759 = vmatmul.bf16.vlgmr.msra.gmra.mxu2 %v327_v42  ;;  %v1905_v42 = vld [vmem:[#allocation8 + $0x20] sm:$0xff] }
  0x49   :  { %803 = vmatpush.bf16.msrb.mxu2 %v1884_v40  ;;  %772 = vmatmul.bf16.vlgmr.msra.gmra.mxu3 %v328_v44  ;;  %v1906_v40 = vld [vmem:[#allocation8 + $0x28] sm:$0xff]  ;;  %v1904_v44 = vld [vmem:[#allocation8 + $0x18] sm:$0xff] }
  0x4a   :  { %816 = vmatpush.bf16.msrb.mxu3 %v1892_v41 }
  0x4b   :  { %778 = vmatpush.bf16.msrb.mxu0 %v1867_v46 }
  0x4c   :  { %791 = vmatpush.bf16.msrb.mxu1 %v1875_v47 }
  0x4d   :  { %804 = vmatpush.bf16.msrb.mxu2 %v1883_v48 }
  0x4e   :  { %817 = vmatpush.bf16.msrb.mxu3 %v1891_v49  ;;  %v1903_v49 = vld [vmem:[#allocation8 + $0x10] sm:$0xff] }
  0x4f   :  { %779 = vmatpush.bf16.msrb.mxu0 %v1866_v50 }
  0x50   :  { %792 = vmatpush.bf16.msrb.mxu1 %v1874_v51 }
  0x51   :  { %805 = vmatpush.bf16.msrb.mxu2 %v1882_v52 }
  0x52   :  { %818 = vmatpush.bf16.msrb.mxu3 %v1890_v53 }
  0x53   :  { %780 = vmatpush.bf16.msrb.mxu0 %v1865_v54 }
  0x54   :  { %793 = vmatpush.bf16.msrb.mxu1 %v1873_v55 }
  0x55   :  { %806 = vmatpush.bf16.msrb.mxu2 %v1881_v56 }
  0x56   :  { %819 = vmatpush.bf16.msrb.mxu3 %v1889_v57 }
  0x57   :  { %781 = vmatpush.bf16.msrb.mxu0 %v1864_v58 }
  0x58   :  { %794 = vmatpush.bf16.msrb.mxu1 %v1872_v59 }
  0x59   :  { %807 = vmatpush.bf16.msrb.mxu2 %v1880_v60 }
  0x5a   :  { %820 = vmatpush.bf16.msrb.mxu3 %v1888_v61  ;;  %v1902_v61 = vld [vmem:[#allocation8 + $0x8] sm:$0xff] }
  0x5b   :  { %782 = vmatpush.bf16.msrb.mxu0 %v1863_v62  ;;  %v1901_v62 = vld [vmem:[#allocation8] sm:$0xff] }
  0x5c   :  { %795 = vmatpush.bf16.msrb.mxu1 %v1871_v63  ;;  %v1916_v63 = vld [vmem:[#allocation10 + $0x38] sm:$0xff] }
  0x5d   :  { %808 = vmatpush.bf16.msrb.mxu2 %v1879_v0  ;;  %v1932_v0 = vld [vmem:[#allocation13 + $0x38] sm:$0xff] }
  0x5e   :  { %821 = vmatpush.bf16.msrb.mxu3 %v1887_v1  ;;  %v1915_v1 = vld [vmem:[#allocation10 + $0x30] sm:$0xff] }
  0x5f   :  { %783 = vmatpush.bf16.msrb.mxu0 %v1862_v2  ;;  %v1931_v2 = vld [vmem:[#allocation13 + $0x30] sm:$0xff] }
  0x60   :  { %796 = vmatpush.bf16.msrb.mxu1 %v1870_v3  ;;  %v1914_v3 = vld [vmem:[#allocation10 + $0x28] sm:$0xff] }
  0x61   :  { %809 = vmatpush.bf16.msrb.mxu2 %v1878_v5  ;;  %v1913_v5 = vld [vmem:[#allocation10 + $0x20] sm:$0xff] }
  0x62   :  { %822 = vmatpush.bf16.msrb.mxu3 %v1886_v6  ;;  %v1929_v6 = vld [vmem:[#allocation13 + $0x20] sm:$0xff] }
  0x63   :  { %784 = vmatpush.bf16.msrb.mxu0 %v1861_v10  ;;  %v1927_v10 = vld [vmem:[#allocation13 + $0x10] sm:$0xff] }
  0x64   :  { %797 = vmatpush.bf16.msrb.mxu1 %v1869_v11  ;;  %v1954_v11 = vld [vmem:[%s2395_s4] ss:$0 sm:$0xff] }
  0x65   :  { %810 = vmatpush.bf16.msrb.mxu2 %v1877_v14 }
  0x66   :  { %823 = vmatpush.bf16.msrb.mxu3 %v1885_v15  ;;  %785 = vmatmul.bf16.vlgmr.msrb.gmra.mxu0 %v329_v16 }
  0x67   :  { %798 = vmatmul.bf16.vlgmr.msrb.gmra.mxu1 %v330_v17  ;;  %899 = vmatpush.bf16.msra.mxu0 %v1900_v20  ;;  %v1925_v20 = vld [vmem:[#allocation13] sm:$0xff] }
  0x68   :  { %811 = vmatmul.bf16.vlgmr.msrb.gmra.mxu2 %v331_v18  ;;  %982 = vmatpush.bf16.msra.mxu1 %v1908_v35 }
  0x69   :  { %824 = vmatmul.bf16.vlgmr.msrb.gmra.mxu3 %v332_v19  ;;  %1064 = vmatpush.bf16.msra.mxu2 %v1916_v63  ;;  %v1909_v19 = vld [vmem:[#allocation10] sm:$0xff] }
  0x6b   :  { %900 = vmatpush.bf16.msra.mxu0 %v1899_v21  ;;  %v1940_v21 = vld [vmem:[#allocation14 + $0x38] sm:$0xff] }
  0x6c   :  { %983 = vmatpush.bf16.msra.mxu1 %v1907_v38 }
  0x6d   :  { %1065 = vmatpush.bf16.msra.mxu2 %v1915_v1 }
  0x6f   :  { %901 = vmatpush.bf16.msra.mxu0 %v1898_v22  ;;  %v1924_v22 = vld [vmem:[#allocation11 + $0x38] sm:$0xff] }
  0x70   :  { %984 = vmatpush.bf16.msra.mxu1 %v1906_v40  ;;  %1146 = vmatpush.bf16.msra.mxu3 %v1924_v22  ;;  %v1918_v40 = vld [vmem:[#allocation11 + $0x8] sm:$0xff] }
  0x71   :  { %1066 = vmatpush.bf16.msra.mxu2 %v1914_v3 }
  0x73   :  { %902 = vmatpush.bf16.msra.mxu0 %v1897_v23  ;;  %v1939_v23 = vld [vmem:[#allocation14 + $0x30] sm:$0xff] }
  0x74   :  { %985 = vmatpush.bf16.msra.mxu1 %v1905_v42  ;;  %v1956_v42 = vld [vmem:[%s2403_s12] ss:$0 sm:$0xff] }
  0x75   :  { %1067 = vmatpush.bf16.msra.mxu2 %v1913_v5 }
  0x77   :  { %903 = vmatpush.bf16.msra.mxu0 %v1896_v24  ;;  %v1923_v24 = vld [vmem:[#allocation11 + $0x30] sm:$0xff] }
  0x78   :  { %986 = vmatpush.bf16.msra.mxu1 %v1904_v44  ;;  %1147 = vmatpush.bf16.msra.mxu3 %v1923_v24 }
  0x79   :  { %1068 = vmatpush.bf16.msra.mxu2 %v1912_v7 }
  0x7b   :  { %904 = vmatpush.bf16.msra.mxu0 %v1895_v26  ;;  %v1922_v26 = vld [vmem:[#allocation11 + $0x28] sm:$0xff] }
  0x7c   :  { %987 = vmatpush.bf16.msra.mxu1 %v1903_v49  ;;  %1148 = vmatpush.bf16.msra.mxu3 %v1922_v26 }
  0x7d   :  { %1069 = vmatpush.bf16.msra.mxu2 %v1911_v9 }
  0x7f   :  { %905 = vmatpush.bf16.msra.mxu0 %v1894_v28  ;;  %v1921_v28 = vld [vmem:[#allocation11 + $0x20] sm:$0xff] }
  0x80   :  { %988 = vmatpush.bf16.msra.mxu1 %v1902_v61  ;;  %1149 = vmatpush.bf16.msra.mxu3 %v1921_v28 }
  0x81   :  { %1070 = vmatpush.bf16.msra.mxu2 %v1910_v12 }
  0x83   :  { %906 = vmatpush.bf16.msra.mxu0 %v1893_v32  ;;  %v1919_v32 = vld [vmem:[#allocation11 + $0x10] sm:$0xff] }
  0x84   :  { %989 = vmatpush.bf16.msra.mxu1 %v1901_v62 }
  0x85   :  { %1071 = vmatpush.bf16.msra.mxu2 %v1909_v19 }
  0x87   :  { %1227 = vmatpush.bf16.msrb.mxu0 %v1932_v0 }
  0x88   :  { %1309 = vmatpush.bf16.msrb.mxu1 %v1940_v21 }
  0x8b   :  { %1228 = vmatpush.bf16.msrb.mxu0 %v1931_v2 }
  0x8c   :  { %1310 = vmatpush.bf16.msrb.mxu1 %v1939_v23 }
  0x8f   :  { %1229 = vmatpush.bf16.msrb.mxu0 %v1930_v4 }
  0x93   :  { %1230 = vmatpush.bf16.msrb.mxu0 %v1929_v6 }
  0x97   :  { %1231 = vmatpush.bf16.msrb.mxu0 %v1928_v8 }
  0x9b   :  { %1232 = vmatpush.bf16.msrb.mxu0 %v1927_v10 }
  0x9f   :  { %1233 = vmatpush.bf16.msrb.mxu0 %v1926_v13 }
  0xa3   :  { %1234 = vmatpush.bf16.msrb.mxu0 %v1925_v20 }
  0xc3   :  { %v734_v25 = vpop.f32.mrf.mxu0 }
  0xc4   :  { %v747_v27 = vpop.f32.mrf.mxu1  ;;  %v735_v39 = vadd.f32 %v1953_v34, %v734_v25  ;;  %v1938_v25 = vld [vmem:[#allocation14 + $0x28] sm:$0xff] }
  0xc5   :  { %1311 = vmatpush.bf16.msrb.mxu1 %v1938_v25  ;;  %v1934_v34 = vld [vmem:[#allocation14 + $0x8] sm:$0xff] }
  0xc6   :  { %v748_v41 = vadd.f32 %v747_v27, %v735_v39  ;;  %v1937_v27 = vld [vmem:[#allocation14 + $0x20] sm:$0xff] }
  0xc7   :  { %v1933_v39 = vld [vmem:[#allocation14] sm:$0xff] }
  0xc9   :  { %1312 = vmatpush.bf16.msrb.mxu1 %v1937_v27 }
  0xcb   :  { %v760_v29 = vpop.f32.mrf.mxu2  ;;  %v736_v31 = vpop.f32.mrf.mxu0 }
  0xcc   :  { %v773_v30 = vpop.f32.mrf.mxu3  ;;  %v749_v33 = vpop.f32.mrf.mxu1  ;;  %v761_v43 = vadd.f32 %v760_v29, %v748_v41  ;;  %v1936_v29 = vld [vmem:[#allocation14 + $0x18] sm:$0xff]  ;;  %v1935_v31 = vld [vmem:[#allocation14 + $0x10] sm:$0xff]  ;;  %v1917_v41 = vld [vmem:[#allocation11] sm:$0xff] }
  0xcd   :  { %1313 = vmatpush.bf16.msrb.mxu1 %v1936_v29  ;;  %v1955_v33 = vld [vmem:[%s2397_s6] ss:$0 sm:$0xff] }
  0xce   :  { %v774_v45 = vadd.f32 %v773_v30, %v761_v43  ;;  %v1920_v30 = vld [vmem:[#allocation11 + $0x18] sm:$0xff] }
  0xcf   :  { %1150 = vmatpush.bf16.msra.mxu3 %v1920_v30 }
  0xd1   :  { %1314 = vmatpush.bf16.msrb.mxu1 %v1935_v31 }
  0xd3   :  { %v762_v36 = vpop.f32.mrf.mxu2  ;;  %1151 = vmatpush.bf16.msra.mxu3 %v1919_v32 }
  0xd4   :  { %v775_v37 = vpop.f32.mrf.mxu3 }
  0xd5   :  { %1315 = vmatpush.bf16.msrb.mxu1 %v1934_v34 }
  0xd7   :  { %1152 = vmatpush.bf16.msra.mxu3 %v1918_v40 }
  0xd9   :  { %1316 = vmatpush.bf16.msrb.mxu1 %v1933_v39 }
  0xdb   :  { %1153 = vmatpush.bf16.msra.mxu3 %v1917_v41 }
  0xe3   :  { %v786_v46 = vpop.f32.mrf.mxu0 }
  0xe4   :  { %v799_v47 = vpop.f32.mrf.mxu1  ;;  %v787_v48 = vadd.f32 %v786_v46, %v774_v45  ;;  %v1957_v46 = vld [vmem:[%s2399_s8] ss:$0 sm:$0xff]  ;;  %s2232_s8 = smov [#allocation16]  }
  0xe6   :  { %v800_v50 = vadd.f32 %v799_v47, %v787_v48 }
  0xeb   :  { %v812_v51 = vpop.f32.mrf.mxu2  ;;  %v788_v54 = vpop.f32.mrf.mxu0 }
  0xec   :  { %v825_v52 = vpop.f32.mrf.mxu3  ;;  %v813_v53 = vadd.f32 %v812_v51, %v800_v50  ;;  %v801_v55 = vpop.f32.mrf.mxu1 }
  0xee   :  { %v826_v56 = vadd.f32 %v825_v52, %v813_v53  ;;  %v1958_v52 = vld [vmem:[%s2405_s14] ss:$0 sm:$0xff] }
  0xf0   :  { %v829_v57 = vmax.f32 %v826_v56, 0.0  ;;  %v1959_v56 = vld [vmem:[%s2401_s10] ss:$0 sm:$0xff]  ;;  %s1349_s10 = sshll.u32 %s2232_s8, 4  ;;  %s1350_s10 = int_to_ptr.vmem [resolvable:$true] %s1349_s10 }
  0xf2   :  { %v847_v58 = vpack.c.bf16 %v829_v57, %v829_v57 }
  0xf3   :  { %v814_v59 = vpop.f32.mrf.mxu2 }
  0xf4   :  { %v827_v60 = vpop.f32.mrf.mxu3  ;;  %907 = vmatmul.bf16.vlgmr.msra.gmra.mxu0 %v847_v58 }
 0x171   :  { %v908_v14 = vpop.f32.mrf.mxu0 }
 0x172   :  { %v909_v15 = vadd.f32 %v1954_v11, %v908_v14 }
 0x174   :  { %v912_v16 = vmax.f32 %v909_v15, 0.0 }
 0x176   :  { %v930_v17 = vpack.c.bf16 %v912_v16, %v912_v16 }
 0x178   :  { %990 = vmatmul.bf16.vlgmr.msra.gmra.mxu1 %v930_v17 }
 0x179   :  { %v910_v18 = vpop.f32.mrf.mxu0 }
 0x1f5   :  { %v991_v35 = vpop.f32.mrf.mxu1 }
 0x1f6   :  { %v992_v36 = vadd.f32 %v1955_v33, %v991_v35 }
 0x1f8   :  { %v1012_v37 = vpack.c.bf16 %v992_v36, %v992_v36 }
 0x1fa   :  { %1072 = vmatmul.bf16.vlgmr.msra.gmra.mxu2 %v1012_v37  ;;  %1235 = vmatmul.bf16.vlgmr.msrb.gmra.mxu0 %v1012_v37 }
 0x1fd   :  { %v993_v38 = vpop.f32.mrf.mxu1 }
 0x277   :  { %v1236_v43 = vpop.f32.mrf.mxu0 }
 0x278   :  { %v1237_v44 = vadd.f32 %v1956_v42, %v1236_v43 }
 0x27a   :  { %v1257_v45 = vpack.c.bf16 %v1237_v44, %v1237_v44 }
 0x27c   :  { %1317 = vmatmul.bf16.vlgmr.msrb.gmra.mxu1 %v1257_v45 }
 0x27d   :  { %v1073_v47 = vpop.f32.mrf.mxu2 }
 0x27e   :  { %v1074_v48 = vadd.f32 %v1957_v46, %v1073_v47 }
 0x27f   :  { %v1238_v49 = vpop.f32.mrf.mxu0 }
 0x280   :  { %v1094_v50 = vpack.c.bf16 %v1074_v48, %v1074_v48 }
 0x282   :  { %1154 = vmatmul.bf16.vlgmr.msra.gmra.mxu3 %v1094_v50 }
 0x285   :  { %v1075_v51 = vpop.f32.mrf.mxu2 }
 0x2f9   :  { %v1318_v53 = vpop.f32.mrf.mxu1 }
 0x2fa   :  { %v1319_v54 = vadd.f32 %v1958_v52, %v1318_v53 }
 0x2fc   :  { %1322 = vmax.xlane.f32.xlu0 %v1319_v54 }
 0x301   :  { %v1320_v55 = vpop.f32.mrf.mxu1 }
 0x305   :  { %v1155_v57 = vpop.f32.mrf.mxu3 }
 0x306   :  { %v1156_v58 = vadd.f32 %v1959_v56, %v1155_v57 }
 0x308   :  { %1333 = vmax.xlane.f32.xlu0 %v1156_v58 }
 0x30d   :  { %v1157_v59 = vpop.f32.mrf.mxu3 }
 0x36f   :  { %v1323_v60 = vpop.xlane.xlu0 %1322 }
 0x370   :  { %v1324_v61 = vsub.f32 %v1319_v54, %v1323_v60 }
 0x372   :  { %v1325_v62 = vmul.f32 1.442695, %v1324_v61 }
 0x374   :  { %1960 = vpow2.f32 %v1325_v62 }
 0x37a   :  { %v1961_v63 = vpop.eup %1960 }
 0x37b   :  { %1327 = vadd.xlane.f32.xlu1 %v1961_v63  ;;  %v1334_v0 = vpop.xlane.xlu0 %1333 }
 0x37c   :  { %v1335_v1 = vsub.f32 %v1156_v58, %v1334_v0 }
 0x37e   :  { %v1336_v2 = vmul.f32 1.442695, %v1335_v1 }
 0x380   :  { %1962 = vpow2.f32 %v1336_v2 }
 0x386   :  { %v1963_v3 = vpop.eup %1962 }
 0x387   :  { %1338 = vadd.xlane.f32.xlu1 %v1963_v3 }
 0x3ee   :  { %v1328_v4 = vpop.xlane.xlu1 %1327 }
 0x3ef   :  { %1964 = vlog2.f32 %v1328_v4 }
 0x3f5   :  { %v1965_v5 = vpop.eup %1964 }
 0x3f6   :  { %v1330_v6 = vmul.f32 0.6931472, %v1965_v5 }
 0x3f8   :  { %v1331_v7 = vsub.f32 %v1324_v61, %v1330_v6 }
 0x3fa   :  { %1332 = vst [vmem:[#allocation16] sm:$0xff] %v1331_v7  ;;  %v1339_v8 = vpop.xlane.xlu1 %1338 }
 0x3fb   :  { %1966 = vlog2.f32 %v1339_v8  ;;  %1354 = dma.vmem_to_hbm [thread:$0]  %s1350_s10, 128, %s1352_s20, [#allocation4]  }
 0x401   :  { %v1967_v9 = vpop.eup %1966 }
 0x402   :  { %v1341_v10 = vmul.f32 0.6931472, %v1967_v9 }
 0x404   :  { %v1342_v11 = vsub.f32 %v1335_v1, %v1341_v10 }
 0x406   :  { %1343 = vst [vmem:[#allocation17] sm:$0xff] %v1342_v11 }
 0x407   :  { %1365 = dma.vmem_to_hbm [thread:$0]  %s1361_s24, 128, %s1363_s22, [#allocation18]  }
 0x408   :  { %2218 = dma.done.wait [#allocation4], 128  }
 0x409   :  { %2219 = vsyncadd [#allocation4], 4294967168 }
 0x40a   :  { %2220 = dma.done.wait [#allocation18], 128  }
 0x40b   :  { %2221 = vsyncadd [#allocation18], 4294967168 }
 0x40c   :  { %1374 = vsyncpa [#allocation3], 1 }
 0x40d   :  { %1375 = vsyncpa [#allocation6], 1 }
 0x40e   :  { %1376 = vsyncpa [#allocation9], 1 }
 0x40f   :  { %1377 = vsyncpa [#allocation12], 1 }
 0x410   :  { %1378 = vsyncpa [#allocation15], 1 }
 0x411   :  { %1379 = vsyncpa [#allocation4], 1 }
 0x412   :  { %1380 = vsyncpa [#allocation18], 1 }

</bundles_post_ra>
